<compile_context>
chip_gen: v7x
topology: tpu7x:2x2x1
jax: 0.10.0
libtpu: 0.0.40
codegen_flags: <defaults>
</compile_context>

<pallas_src>
import functools
import math

import jax
import jax.numpy as jnp
from jax import lax
from jax.experimental import pallas as pl
from jax.experimental.pallas import tpu as pltpu


_BLOCK_BYTES = 4 * 1024 * 1024        # ~4 MiB per input block (per review)
_VMEM_LIMIT = 40 << 20                # headroom under v7x's 64 MiB physical VMEM


def _sublane_align(dtype) -> int:
    """Packed sublane tile: 8 rows for 32-bit, 16 for bf16, 32 for int8/fp8."""
    itemsize = jnp.dtype(dtype).itemsize
    return 8 * max(1, 4 // itemsize)


def _compiler_params(dim_semantics):
    return pltpu.CompilerParams(
        dimension_semantics=dim_semantics,
        vmem_limit_bytes=_VMEM_LIMIT,
    )


# ----------------------------------------------------------------------------
# channels_last: normalize over the last dim. Kernel sees (TN, C) row tiles.
# ----------------------------------------------------------------------------
def _ln_last_kernel(x_ref, w_ref, b_ref, o_ref, *, eps):
    x = x_ref[...].astype(jnp.float32)                        # (TN, C)
    inv_c = 1.0 / x.shape[-1]
    mean = jnp.sum(x, axis=-1, keepdims=True) * inv_c         # (TN, 1)
    meansq = jnp.sum(x * x, axis=-1, keepdims=True) * inv_c   # (TN, 1)
    var = jnp.maximum(meansq - mean * mean, 0.0)               # clamp: cancellation
    inv = lax.rsqrt(var + eps)
    w = w_ref[...].astype(jnp.float32)                         # (1, C)
    b = b_ref[...].astype(jnp.float32)
    o_ref[...] = ((x - mean) * inv * w + b).astype(o_ref.dtype)


def layer_norm_channels_last(x, weight, bias, *, eps=1e-6):
    """x: (..., C); weight/bias: (C,)."""
    orig_shape = x.shape
    C = orig_shape[-1]
    flat = x.reshape(-1, C)
    N = flat.shape[0]

    itemsize = jnp.dtype(x.dtype).itemsize
    align = _sublane_align(x.dtype)

    # Rows per block from the byte budget (reduction dim C is never split).
    # TODO(synk): no intra-C tiling path; extremely large C (> block budget per
    # row) still holds a full (align, C) slab in VMEM.
    rows_budget = max(align, _BLOCK_BYTES // max(1, C * itemsize))
    if rows_budget >= N:
        bn = N                                   # full extent, grid of 1
    else:
        bn = max(align, (rows_budget // align) * align)

    total = N * C
    cost = pl.CostEstimate(
        flops=7 * total,
        transcendentals=N,
        bytes_accessed=2 * total * itemsize + 2 * C * 4,
    )

    w2 = weight.reshape(1, C)
    b2 = bias.reshape(1, C)

    out_flat = pl.pallas_call(
        functools.partial(_ln_last_kernel, eps=float(eps)),
        out_shape=jax.ShapeDtypeStruct((N, C), x.dtype),
        grid=(pl.cdiv(N, bn),),                  # edge block masked by Pallas
        in_specs=[
            pl.BlockSpec((bn, C), lambda i: (i, 0)),
            pl.BlockSpec((1, C), lambda i: (0, 0)),
            pl.BlockSpec((1, C), lambda i: (0, 0)),
        ],
        out_specs=pl.BlockSpec((bn, C), lambda i: (i, 0)),
        compiler_params=_compiler_params(("parallel",)),
        cost_estimate=cost,
    )(flat, w2, b2)

    return out_flat.reshape(orig_shape)


# ----------------------------------------------------------------------------
# channels_first: normalize over axis 1 (C). Kernel sees (TB, C, TS) tiles with
# the spatial axis lane-dense and C on sublanes (XLU reduction).
# ----------------------------------------------------------------------------
def _ln_first_kernel(x_ref, w_ref, b_ref, o_ref, *, eps):
    x = x_ref[...].astype(jnp.float32)                        # (TB, C, TS)
    inv_c = 1.0 / x.shape[1]
    mean = jnp.sum(x, axis=1, keepdims=True) * inv_c          # (TB, 1, TS)
    meansq = jnp.sum(x * x, axis=1, keepdims=True) * inv_c    # (TB, 1, TS)
    var = jnp.maximum(meansq - mean * mean, 0.0)
    inv = lax.rsqrt(var + eps)
    w = w_ref[...].astype(jnp.float32)                        # (1, C, 1)
    b = b_ref[...].astype(jnp.float32)
    o_ref[...] = ((x - mean) * inv * w + b).astype(o_ref.dtype)


def layer_norm_channels_first(x, weight, bias, *, eps=1e-6):
    """x: (B, C, *spatial); weight/bias: (C,)."""
    B, C = x.shape[0], x.shape[1]
    S = int(math.prod(x.shape[2:])) if len(x.shape) > 2 else 1
    x3 = x.reshape(B, C, S)

    itemsize = jnp.dtype(x.dtype).itemsize

    # Spatial (lane) tile first: multiple of 128 or the full extent.
    cols_budget = max(128, _BLOCK_BYTES // max(1, C * itemsize))
    if cols_budget >= S:
        ts = S                                   # full extent
    else:
        ts = max(128, (cols_budget // 128) * 128)

    # Then grow the batch tile so each step moves ~the byte budget.
    slab_bytes = max(1, C * ts * itemsize)
    tb = max(1, _BLOCK_BYTES // slab_bytes)
    tb = min(tb, B)

    total = B * C * S
    cost = pl.CostEstimate(
        flops=7 * total,
        transcendentals=B * S,
        bytes_accessed=2 * total * itemsize + 2 * C * 4,
    )

    w3 = weight.reshape(1, C, 1)
    b3 = bias.reshape(1, C, 1)

    out3 = pl.pallas_call(
        functools.partial(_ln_first_kernel, eps=float(eps)),
        out_shape=jax.ShapeDtypeStruct((B, C, S), x.dtype),
        grid=(pl.cdiv(B, tb), pl.cdiv(S, ts)),   # edge blocks masked by Pallas
        in_specs=[
            pl.BlockSpec((tb, C, ts), lambda b, s: (b, 0, s)),
            pl.BlockSpec((1, C, 1), lambda b, s: (0, 0, 0)),
            pl.BlockSpec((1, C, 1), lambda b, s: (0, 0, 0)),
        ],
        out_specs=pl.BlockSpec((tb, C, ts), lambda b, s: (b, 0, s)),
        compiler_params=_compiler_params(("parallel", "parallel")),
        cost_estimate=cost,
    )(x3, w3, b3)

    return out3.reshape(x.shape)


def layer_norm_pallas(x, weight, bias, *, eps=1e-6, data_format="channels_last"):
    if data_format == "channels_last":
        return layer_norm_channels_last(x, weight, bias, eps=eps)
    elif data_format == "channels_first":
        return layer_norm_channels_first(x, weight, bias, eps=eps)
    raise NotImplementedError(data_format)


if __name__ == "__main__":
    key = jax.random.PRNGKey(0)
    k1, k2, k3, k4 = jax.random.split(key, 4)
    eps = 1e-6

    # ---- channels_first: x (B=2, C=4, H=16, W=16), weight/bias (4,) ----
    B, C, H, W = 2, 4, 16, 16
    x_cf = jax.random.normal(k1, (B, C, H, W), dtype=jnp.float32)
    w_cf = 1.0 + 0.1 * jax.random.normal(k2, (C,), dtype=jnp.float32)
    b_cf = 0.1 * jax.random.normal(k3, (C,), dtype=jnp.float32)

    y_cf = jax.block_until_ready(
        layer_norm_pallas(x_cf, w_cf, b_cf, eps=eps, data_format="channels_first"))

    u = jnp.mean(x_cf, axis=1, keepdims=True)
    s = jnp.mean((x_cf - u) ** 2, axis=1, keepdims=True)
    ref_cf = (x_cf - u) / jnp.sqrt(s + eps)
    ref_cf = w_cf[None, :, None, None] * ref_cf + b_cf[None, :, None, None]
    assert jnp.allclose(y_cf, ref_cf, rtol=1e-5, atol=1e-5), "channels_first mismatch"

    # ---- channels_last: x (2, 16, 16, 32), weight/bias (32,) ----
    Cl = 32
    x_cl = jax.random.normal(k4, (2, 16, 16, Cl), dtype=jnp.float32)
    w_cl = jnp.full((Cl,), 1.5, dtype=jnp.float32)
    b_cl = jnp.full((Cl,), 0.25, dtype=jnp.float32)

    y_cl = jax.block_until_ready(
        layer_norm_pallas(x_cl, w_cl, b_cl, eps=eps, data_format="channels_last"))

    u2 = jnp.mean(x_cl, axis=-1, keepdims=True)
    s2 = jnp.mean((x_cl - u2) ** 2, axis=-1, keepdims=True)
    ref_cl = (x_cl - u2) / jnp.sqrt(s2 + eps) * w_cl + b_cl
    assert jnp.allclose(y_cl, ref_cl, rtol=1e-5, atol=1e-5), "channels_last mismatch"

    print("KERNEL_OK")
</pallas_src>

<mosaic_0001>
module attributes {stable_mosaic.version = 11 : i64} {
  func.func @_ln_first_kernel(%arg0: i32, %arg1: i32, %arg2: memref<2x4x256xf32, #tpu.memory_space<vmem>>, %arg3: memref<1x4x1xf32, #tpu.memory_space<vmem>>, %arg4: memref<1x4x1xf32, #tpu.memory_space<vmem>>, %arg5: memref<2x4x256xf32, #tpu.memory_space<vmem>>) attributes {dimension_semantics = [#tpu.dimension_semantics<parallel>, #tpu.dimension_semantics<parallel>], iteration_bounds = array<i64: 1, 1>, scalar_prefetch = 0 : i64, scratch_operands = 0 : i64, tpu.core_type = #tpu.core_type<tc>, window_params = [{transform_indices = @transform_0, window_bounds = array<i64: 2, 4, 256>}, {pipeline_mode = #tpu.pipeline_mode<synchronous>, transform_indices = @transform_1, window_bounds = array<i64: 1, 4, 1>}, {pipeline_mode = #tpu.pipeline_mode<synchronous>, transform_indices = @transform_2, window_bounds = array<i64: 1, 4, 1>}, {transform_indices = @transform_3, window_bounds = array<i64: 2, 4, 256>}]} {
    %c0 = arith.constant 0 : index
    %c0_0 = arith.constant 0 : index
    %c0_1 = arith.constant 0 : index
    %0 = vector.load %arg2[%c0, %c0_0, %c0_1] : memref<2x4x256xf32, #tpu.memory_space<vmem>>, vector<2x4x256xf32>
    %cst = arith.constant dense<0.000000e+00> : vector<2x256xf32>
    %1 = vector.multi_reduction <add>, %0, %cst [1] : vector<2x4x256xf32> to vector<2x256xf32>
    %2 = vector.shape_cast %1 : vector<2x256xf32> to vector<2x1x256xf32>
    %cst_2 = arith.constant 2.500000e-01 : f32
    %3 = vector.broadcast %cst_2 : f32 to vector<2x1x256xf32>
    %4 = arith.mulf %2, %3 : vector<2x1x256xf32>
    %5 = arith.mulf %0, %0 : vector<2x4x256xf32>
    %cst_3 = arith.constant dense<0.000000e+00> : vector<2x256xf32>
    %6 = vector.multi_reduction <add>, %5, %cst_3 [1] : vector<2x4x256xf32> to vector<2x256xf32>
    %7 = vector.shape_cast %6 : vector<2x256xf32> to vector<2x1x256xf32>
    %cst_4 = arith.constant 2.500000e-01 : f32
    %8 = vector.broadcast %cst_4 : f32 to vector<2x1x256xf32>
    %9 = arith.mulf %7, %8 : vector<2x1x256xf32>
    %10 = arith.mulf %4, %4 : vector<2x1x256xf32>
    %11 = arith.subf %9, %10 : vector<2x1x256xf32>
    %cst_5 = arith.constant 0.000000e+00 : f32
    %12 = vector.broadcast %cst_5 : f32 to vector<2x1x256xf32>
    %13 = arith.maximumf %11, %12 : vector<2x1x256xf32>
    %cst_6 = arith.constant 9.99999997E-7 : f32
    %14 = vector.broadcast %cst_6 : f32 to vector<2x1x256xf32>
    %15 = arith.addf %13, %14 : vector<2x1x256xf32>
    %16 = math.rsqrt %15 : vector<2x1x256xf32>
    %c0_7 = arith.constant 0 : index
    %c0_8 = arith.constant 0 : index
    %c0_9 = arith.constant 0 : index
    %17 = vector.load %arg3[%c0_7, %c0_8, %c0_9] : memref<1x4x1xf32, #tpu.memory_space<vmem>>, vector<1x4x1xf32>
    %c0_10 = arith.constant 0 : index
    %c0_11 = arith.constant 0 : index
    %c0_12 = arith.constant 0 : index
    %18 = vector.load %arg4[%c0_10, %c0_11, %c0_12] : memref<1x4x1xf32, #tpu.memory_space<vmem>>, vector<1x4x1xf32>
    %19 = vector.broadcast %4 : vector<2x1x256xf32> to vector<2x4x256xf32>
    %20 = arith.subf %0, %19 : vector<2x4x256xf32>
    %21 = vector.broadcast %16 : vector<2x1x256xf32> to vector<2x4x256xf32>
    %22 = arith.mulf %20, %21 : vector<2x4x256xf32>
    %23 = vector.broadcast %17 : vector<1x4x1xf32> to vector<2x4x256xf32>
    %24 = arith.mulf %22, %23 : vector<2x4x256xf32>
    %25 = vector.broadcast %18 : vector<1x4x1xf32> to vector<2x4x256xf32>
    %26 = arith.addf %24, %25 : vector<2x4x256xf32>
    %c0_13 = arith.constant 0 : index
    %c0_14 = arith.constant 0 : index
    %c0_15 = arith.constant 0 : index
    %27 = vector.load %arg5[%c0_13, %c0_14, %c0_15] : memref<2x4x256xf32, #tpu.memory_space<vmem>>, vector<2x4x256xf32>
    tpu.vector_store %arg5[%c0_13, %c0_14, %c0_15], %26 {strides = array<i32>} : memref<2x4x256xf32, #tpu.memory_space<vmem>>, vector<2x4x256xf32>,
    return
  }
  func.func @transform_0(%arg0: i32, %arg1: i32) -> (i32, i32, i32) {
    %c0_i32 = arith.constant 0 : i32
    %c0_i32_0 = arith.constant 0 : i32
    return %arg0, %c0_i32, %arg1 : i32, i32, i32
  }
  func.func @transform_1(%arg0: i32, %arg1: i32) -> (i32, i32, i32) {
    %c0_i32 = arith.constant 0 : i32
    %c0_i32_0 = arith.constant 0 : i32
    %c0_i32_1 = arith.constant 0 : i32
    %c0_i32_2 = arith.constant 0 : i32
    return %c0_i32, %c0_i32_0, %c0_i32_1 : i32, i32, i32
  }
  func.func @transform_2(%arg0: i32, %arg1: i32) -> (i32, i32, i32) {
    %c0_i32 = arith.constant 0 : i32
    %c0_i32_0 = arith.constant 0 : i32
    %c0_i32_1 = arith.constant 0 : i32
    %c0_i32_2 = arith.constant 0 : i32
    return %c0_i32, %c0_i32_0, %c0_i32_1 : i32, i32, i32
  }
  func.func @transform_3(%arg0: i32, %arg1: i32) -> (i32, i32, i32) {
    %c0_i32 = arith.constant 0 : i32
    %c0_i32_0 = arith.constant 0 : i32
    return %arg0, %c0_i32, %arg1 : i32, i32, i32
  }
}

</mosaic_0001>

<bundles_post_ra>
// kernel: tpu_custom_call.1
= control target key start
LH: loop header
LB: loop body
LE: loop exit
PB: predicated region body
PF: predicated region fallthrough
CT: control target
= control target key end

     0   :  { %8 = vsyncpa [#allocation3], 0  ;;  %s350_s0 = inlined_call_operand.hbm [shape: f32[2,4,256], index: 0, kind: input, shape index: {}]   ;;  %s351_s1 = inlined_call_operand.vmem [shape: f32[1,4,1], index: 1, kind: input, shape index: {}]   ;;  %s352_s2 = inlined_call_operand.vmem [shape: f32[1,4,1], index: 2, kind: input, shape index: {}]   ;;  %s353_s3 = inlined_call_operand.hbm [shape: f32[2,4,256], index: 3, kind: output, shape index: {}]  }
   0x1   :  { %9 = vsyncpa [#allocation4], 0  ;;  %s264_s12 = smov [#allocation2]   ;;  %s216_s16 = scalar_lea.hbm %s350_s0, 256 }
   0x2   :  { %s15_s13 = sshll.u32 %s264_s12, 4  ;;  %p217_p0 = scmp.ne.s32.totalorder %s350_s0, %s216_s16  ;;  %s16_s13 = int_to_ptr.vmem [resolvable:$true] %s15_s13 }
   0x3   :  { %p220_p1 = scmp.lt.u32.totalorder %s216_s16, %s350_s0 }
   0x5   :  { %p222_p2 = pnand %p220_p1, %p217_p0 }
   0x7   :  { %225 = shalt.err (!%p222_p2)
}
   0x8   :  { %s226_s21 = scalar_lea.vmem %s16_s13, 256  ;;  %p231_p4 = scmp.lt.s32.totalorder %s16_s13, %s16_s13 }
   0x9   :  { %p227_p3 = scmp.ne.s32.totalorder %s16_s13, %s226_s21  ;;  %p232_p5 = scmp.lt.s32.totalorder %s226_s21, %s226_s21 }
   0xb   :  { %p233_p6 = por %p232_p5, %p231_p4 }
   0xd   :  { %p234_p7 = pnand %p233_p6, %p227_p3 }
   0xf   :  { %237 = shalt.err (!%p234_p7)
}
  0x10   :  { %s265_s22 = smov 128   ;;  %s266_s23 = smov 8  }
  0x11   :  { %21 = dma.hbm_to_vmem [thread:$0]  %s350_s0, 256, %s16_s13, [#allocation3], %s265_s22, %s265_s22, %s266_s23  }
  0x12   :  { %260 = dma.done.wait [#allocation3], 256  }
  0x13   :  { %261 = vsyncadd [#allocation3], 4294967040  ;;  %v267_v0 = vmov 0   ;;  %v130_v1 = vld [vmem:[%s351_s1] sm:$0xf]  ;;  %v313_v4 = vld [vmem:[#allocation2 + $0x8] sm:$0xff] }
  0x14   :  { %205 = vset.pattern.permute.xlu0 %v267_v0  ;;  %v131_v2 = vld [vmem:[%s352_s2] sm:$0xf]  ;;  %vm37_vm0 = vcmask 1043456   ;;  %v34_v7 = vcombine.high %v313_v4, %v313_v4  ;;  %v71_v8 = vmul.f32 %v313_v4, %v313_v4  ;;  %s269_s0 = smov [#allocation5]  }
  0x15   :  { %154 = vperm.xlu0 %205, %v130_v1   ;;  %v311_v3 = vld [vmem:[#allocation2] sm:$0xff]  ;;  %v52_v12 = vsel %vm37_vm0, %v313_v4, 0.0  ;;  %s187_s1 = sshll.u32 %s269_s0, 4  ;;  %s188_s1 = int_to_ptr.vmem [resolvable:$true] %s187_s1 }
  0x16   :  { %v33_v5 = vcombine.high %v311_v3, %v311_v3  ;;  %v70_v6 = vmul.f32 %v311_v3, %v311_v3  ;;  %v38_v9 = vsel %vm37_vm0, %v311_v3, 0.0  ;;  %v59_v14 = vsel %vm37_vm0, %v34_v7, 0.0  ;;  %s238_s2 = scalar_lea.vmem %s188_s1, 256  ;;  %p243_p9 = scmp.lt.s32.totalorder %s188_s1, %s188_s1 }
  0x17   :  { %v39_v13 = vrot.slane %v38_v9, 4  ;;  %v75_v15 = vcombine.high %v71_v8, %v71_v8  ;;  %v53_v18 = vrot.slane %v52_v12, 4  ;;  %v60_v20 = vrot.slane %v59_v14, 4  ;;  %p239_p8 = scmp.ne.s32.totalorder %s188_s1, %s238_s2  ;;  %p244_p10 = scmp.lt.s32.totalorder %s238_s2, %s238_s2 }
  0x18   :  { %v45_v10 = vsel %vm37_vm0, %v33_v5, 0.0  ;;  %v74_v11 = vcombine.high %v70_v6, %v70_v6  ;;  %v78_v17 = vsel %vm37_vm0, %v70_v6, 0.0  ;;  %v92_v21 = vsel %vm37_vm0, %v71_v8, 0.0 }
  0x19   :  { %168 = vperm.xlu0 %205, %v131_v2   ;;  %v46_v16 = vrot.slane %v45_v10, 4  ;;  %v40_v22 = vadd.f32 %v39_v13, %v38_v9  ;;  %v79_v23 = vrot.slane %v78_v17, 4  ;;  %v99_v24 = vsel %vm37_vm0, %v75_v15, 0.0  ;;  %p245_p11 = por %p244_p10, %p243_p9 }
  0x1a   :  { %v85_v19 = vsel %vm37_vm0, %v74_v11, 0.0  ;;  %v54_v27 = vadd.f32 %v53_v18, %v52_v12  ;;  %v93_v28 = vrot.slane %v92_v21, 4  ;;  %v61_v29 = vadd.f32 %v60_v20, %v59_v14 }
  0x1b   :  { %v47_v25 = vadd.f32 %v46_v16, %v45_v10  ;;  %v86_v26 = vrot.slane %v85_v19, 4  ;;  %v100_v30 = vrot.slane %v99_v24, 4  ;;  %v41_v31 = vrot.slane %v40_v22, 2  ;;  %p246_p12 = pnand %p245_p11, %p239_p8 }
  0x1c   :  { %v80_v32 = vadd.f32 %v79_v23, %v78_v17  ;;  %v55_v35 = vrot.slane %v54_v27, 2  ;;  %v94_v36 = vadd.f32 %v93_v28, %v92_v21  ;;  %v62_v37 = vrot.slane %v61_v29, 2 }
  0x1d   :  { %v48_v33 = vrot.slane %v47_v25, 2  ;;  %v87_v34 = vadd.f32 %v86_v26, %v85_v19  ;;  %v101_v38 = vadd.f32 %v100_v30, %v99_v24  ;;  %v42_v39 = vadd.f32 %v41_v31, %v40_v22 }
  0x1e   :  { %v81_v40 = vrot.slane %v80_v32, 2  ;;  %v56_v43 = vadd.f32 %v55_v35, %v54_v27  ;;  %v95_v44 = vrot.slane %v94_v36, 2  ;;  %v63_v45 = vadd.f32 %v62_v37, %v61_v29 }
  0x1f   :  { %v49_v41 = vadd.f32 %v48_v33, %v47_v25  ;;  %v88_v42 = vrot.slane %v87_v34, 2  ;;  %v102_v46 = vrot.slane %v101_v38, 2  ;;  %v43_v47 = vrot.slane %v42_v39, 1 }
  0x20   :  { %v82_v48 = vadd.f32 %v81_v40, %v80_v32  ;;  %v57_v51 = vrot.slane %v56_v43, 1  ;;  %v96_v52 = vadd.f32 %v95_v44, %v94_v36  ;;  %v64_v53 = vrot.slane %v63_v45, 1 }
  0x21   :  { %v50_v49 = vrot.slane %v49_v41, 1  ;;  %v89_v50 = vadd.f32 %v88_v42, %v87_v34  ;;  %v103_v54 = vadd.f32 %v102_v46, %v101_v38  ;;  %v44_v55 = vadd.f32 %v43_v47, %v42_v39 }
  0x22   :  { %v83_v56 = vrot.slane %v82_v48, 1  ;;  %v58_v59 = vadd.f32 %v57_v51, %v56_v43  ;;  %v97_v60 = vrot.slane %v96_v52, 1  ;;  %v65_v61 = vadd.f32 %v64_v53, %v63_v45 }
  0x23   :  { %v51_v57 = vadd.f32 %v50_v49, %v49_v41  ;;  %v90_v58 = vrot.slane %v89_v50, 1  ;;  %v104_v62 = vrot.slane %v103_v54, 1  ;;  %v66_v63 = vmul.f32 0.25, %v44_v55 }
  0x24   :  { %v84_v0 = vadd.f32 %v83_v56, %v82_v48  ;;  %v68_v5 = vmul.f32 0.25, %v58_v59  ;;  %v98_v6 = vadd.f32 %v97_v60, %v96_v52  ;;  %v69_v7 = vmul.f32 0.25, %v65_v61 }
  0x25   :  { %v67_v1 = vmul.f32 0.25, %v51_v57  ;;  %v91_v2 = vadd.f32 %v90_v58, %v89_v50  ;;  %v105_v8 = vadd.f32 %v104_v62, %v103_v54  ;;  %v110_v10 = vmul.f32 %v66_v63, %v66_v63 }
  0x26   :  { %v106_v9 = vmul.f32 0.25, %v84_v0  ;;  %v108_v13 = vmul.f32 0.25, %v98_v6  ;;  %v112_v14 = vmul.f32 %v68_v5, %v68_v5  ;;  %v113_v16 = vmul.f32 %v69_v7, %v69_v7 }
  0x27   :  { %v107_v11 = vmul.f32 0.25, %v91_v2  ;;  %v111_v12 = vmul.f32 %v67_v1, %v67_v1  ;;  %v109_v15 = vmul.f32 0.25, %v105_v8  ;;  %v268_v29 = vmov 839922192  }
  0x28   :  { %v114_v17 = vsub.f32 %v106_v9, %v110_v10  ;;  %v116_v19 = vsub.f32 %v108_v13, %v112_v14  ;;  %v157_v30 = vunpack.c.l.s4 %v268_v29  ;;  %v159_v31 = vlaneseq }
  0x29   :  { %v115_v18 = vsub.f32 %v107_v11, %v111_v12  ;;  %v117_v20 = vsub.f32 %v109_v15, %v113_v16  ;;  %v136_v37 = vcombine.low %v66_v63, %v67_v1  ;;  %v137_v38 = vcombine.low %v68_v5, %v69_v7 }
  0x2a   :  { %v118_v21 = vmax.f32 %v114_v17, 0.0  ;;  %v120_v23 = vmax.f32 %v116_v19, 0.0  ;;  %v158_v34 = vunpack.c.0.s8 %v157_v30  ;;  %v160_v35 = vshrl.u32 %v159_v31, 7 }
  0x2b   :  { %v119_v22 = vmax.f32 %v115_v18, 0.0  ;;  %v121_v24 = vmax.f32 %v117_v20, 0.0  ;;  %v140_v41 = vsub.f32 %v311_v3, %v136_v37  ;;  %v141_v42 = vsub.f32 %v313_v4, %v137_v38 }
  0x2c   :  { %v122_v25 = vadd.f32 1e-06, %v118_v21  ;;  %v124_v27 = vadd.f32 1e-06, %v120_v23  ;;  %v161_v40 = vsub.s32 %v158_v34, %v160_v35 }
  0x2d   :  { %v123_v26 = vadd.f32 1e-06, %v119_v22  ;;  %v125_v28 = vadd.f32 1e-06, %v121_v24 }
  0x2e   :  { %208 = vrsqrt.f32 %v122_v25 }
  0x2f   :  { %210 = vrsqrt.f32 %v123_v26 }
  0x30   :  { %212 = vrsqrt.f32 %v124_v27 }
  0x31   :  { %214 = vrsqrt.f32 %v125_v28 }
  0x38   :  { %v209_v32 = vpop.eup %208 }
  0x39   :  { %v211_v33 = vpop.eup %210 }
  0x3a   :  { %v213_v36 = vpop.eup %212  ;;  %v146_v43 = vcombine.low %v209_v32, %v211_v33 }
  0x3b   :  { %v215_v39 = vpop.eup %214 }
  0x3c   :  { %v147_v44 = vcombine.low %v213_v36, %v215_v39  ;;  %v150_v46 = vmul.f32 %v146_v43, %v140_v41 }
  0x3e   :  { %v151_v47 = vmul.f32 %v147_v44, %v141_v42 }
  0x94   :  { %v155_v45 = vpop.permute.xlu0 %154 }
  0x95   :  { %v162_v48 = vrot.slane %v155_v45, %v161_v40 }
  0x97   :  { %v164_v50 = vmul.f32 %v162_v48, %v150_v46  ;;  %v165_v51 = vmul.f32 %v162_v48, %v151_v47 }
  0x98   :  { %v169_v49 = vpop.permute.xlu0 %168 }
  0x99   :  { %v176_v52 = vrot.slane %v169_v49, %v161_v40 }
  0x9b   :  { %v178_v53 = vadd.f32 %v176_v52, %v164_v50  ;;  %v179_v54 = vadd.f32 %v176_v52, %v165_v51 }
  0x9d   :  { %180 = vst [vmem:[#allocation5] sm:$0xff] %v178_v53  ;;  %181 = vst [vmem:[#allocation5 + $0x8] sm:$0xff] %v179_v54 }
  0x9e   :  { %249 = shalt.err (!%p246_p12)
}
  0x9f   :  { %s250_s5 = scalar_lea.hbm %s353_s3, 256 }
  0xa0   :  { %p251_p13 = scmp.ne.s32.totalorder %s353_s3, %s250_s5  ;;  %p254_p0 = scmp.lt.u32.totalorder %s250_s5, %s353_s3 }
  0xa2   :  { %p256_p1 = pnand %p254_p0, %p251_p13 }
  0xa4   :  { %259 = shalt.err (!%p256_p1)
}
  0xa5   :  { %193 = dma.vmem_to_hbm [thread:$0]  %s188_s1, 256, %s353_s3, [#allocation4], %s265_s22, %s265_s22, %s266_s23  }
  0xa6   :  { %262 = dma.done.wait [#allocation4], 256  }
  0xa7   :  { %263 = vsyncadd [#allocation4], 4294967040 }
  0xa8   :  { %197 = vsyncpa [#allocation3], 1 }
  0xa9   :  { %198 = vsyncpa [#allocation4], 1 }

</bundles_post_ra>
